<compile_context>
chip_gen: v5e
topology: v5e:2x2
jax: 0.10.0
libtpu: 0.0.40
codegen_flags: <defaults>
</compile_context>

<pallas_src>
import math

import jax
import jax.numpy as jnp
from jax.experimental import pallas as pl
from jax.experimental.pallas import tpu as pltpu

MIN_LOG_STD = math.log(1e-06)
MAX_LOG_STD = math.log(1.0)


def policy_fwd_kernel(x_ref, w1_ref, b1_ref, w2_ref, b2_ref, wmu_ref, bmu_ref,
                      mu_ref):
    # x_ref: [TB, state_size] (native torch layout).  Flip to [S, TB] in-kernel
    # so the batch sits on the 128-wide lane axis for all downstream
    # elementwise / matmul / store traffic (lane-dense output stores).
    xt = x_ref[...].T.astype(jnp.bfloat16)                       # [S, TB]
    # bf16 MXU operands, f32 accumulate; bias/relu/tanh in f32.
    h1 = jnp.dot(w1_ref[...].astype(jnp.bfloat16), xt,
                 preferred_element_type=jnp.float32) + b1_ref[...]
    h1 = jnp.maximum(h1, 0.0)                                    # [fc1, TB]
    h2 = jnp.dot(w2_ref[...].astype(jnp.bfloat16), h1.astype(jnp.bfloat16),
                 preferred_element_type=jnp.float32) + b2_ref[...]
    h2 = jnp.maximum(h2, 0.0)                                    # [fc2, TB]
    mu = jnp.dot(wmu_ref[...].astype(jnp.bfloat16), h2.astype(jnp.bfloat16),
                 preferred_element_type=jnp.float32) + bmu_ref[...]
    mu_ref[...] = jnp.tanh(mu)                                   # [act, TB]


def _round_up(n, m):
    return ((n + m - 1) // m) * m


def policy_forward(x, params, *, batch_tile=4096, transposed_output=False):
    """Returns (mu, scale): parameters of Independent(Normal(mu, scale), 1).

    mu is [batch, action_size] by default; with transposed_output=True it is
    returned in the kernel's lane-dense [action_size, batch] layout (no extra
    output pass).
    """
    w1, b1, w2, b2, wmu, bmu, sigma = params
    x = x.astype(jnp.float32)
    batch, state_size = x.shape
    action_size = wmu.shape[0]

    if batch <= 128:
        # One block covering the whole (tiny) batch: block dims equal the full
        # array dims, so no padding and no extra wrapper passes at all.
        tb = batch
    else:
        tb = min(_round_up(batch_tile, 128), _round_up(batch, 128))
        if batch > 256:
            # Keep >= 2 grid steps so the "parallel" axis can split across
            # both TensorCores on v7x (no-op on single-TC v5e/v6e).
            tb = min(tb, _round_up(pl.cdiv(batch, 2), 128))
    padded = _round_up(batch, tb)
    # Only ragged batches (batch % tb != 0) pay a small pad; no transpose ever.
    x_in = x if padded == batch else jnp.pad(x, ((0, padded - batch), (0, 0)))

    resident = pl.BlockSpec(memory_space=pltpu.MemorySpace.VMEM)

    mu_t = pl.pallas_call(
        policy_fwd_kernel,
        grid=(padded // tb,),
        in_specs=[
            pl.BlockSpec((tb, state_size), lambda i: (i, 0)),   # x (batch-tiled)
            resident, resident,                                  # w1, b1
            resident, resident,                                  # w2, b2
            resident, resident,                                  # wmu, bmu
        ],
        out_specs=pl.BlockSpec((action_size, tb), lambda i: (0, i)),
        out_shape=jax.ShapeDtypeStruct((action_size, padded), jnp.float32),
        compiler_params=pltpu.CompilerParams(
            dimension_semantics=("parallel",)),
    )(x_in, w1, b1, w2, b2, wmu, bmu)

    # Batch-independent (8 elements of work) -> computed outside the kernel.
    scale = jnp.exp(jnp.clip(sigma, MIN_LOG_STD, MAX_LOG_STD))

    if transposed_output:
        mu = mu_t if padded == batch else mu_t[:, :batch]
        return mu, scale
    # torch-compatible [batch, action_size]; one extra transpose pass.
    return mu_t[:, :batch].T, scale


def xavier_uniform(key, out_f, in_f):
    bound = math.sqrt(6.0 / (in_f + out_f))
    # torch nn.Linear layout: [out_features, in_features]
    return jax.random.uniform(key, (out_f, in_f), jnp.float32, -bound, bound)


def make_params(key, state_size, action_size, fc1=32, fc2=32, init_std=1.0):
    k1, k2, k3 = jax.random.split(key, 3)
    w1 = xavier_uniform(k1, fc1, state_size)
    b1 = jnp.zeros((fc1, 1), jnp.float32)
    w2 = xavier_uniform(k2, fc2, fc1)
    b2 = jnp.zeros((fc2, 1), jnp.float32)
    wmu = xavier_uniform(k3, action_size, fc2)
    bmu = jnp.zeros((action_size, 1), jnp.float32)
    sigma = jnp.full((action_size,), math.log(init_std), jnp.float32)
    return (w1, b1, w2, b2, wmu, bmu, sigma)


def _reference(x, params):
    w1, b1, w2, b2, wmu, bmu, sigma = params
    h1 = jnp.maximum(x @ w1.T + b1[:, 0], 0.0)
    h2 = jnp.maximum(h1 @ w2.T + b2[:, 0], 0.0)
    mu = jnp.tanh(h2 @ wmu.T + bmu[:, 0])
    scale = jnp.exp(jnp.clip(sigma, MIN_LOG_STD, MAX_LOG_STD))
    return mu, scale


if __name__ == "__main__":
    key = jax.random.PRNGKey(0)
    kx, kp = jax.random.split(key)

    batch, state_size, action_size = 8, 16, 8
    x = jax.random.normal(kx, (batch, state_size), jnp.float32)
    params = make_params(kp, state_size, action_size, fc1=32, fc2=32)

    mu, scale = policy_forward(x, params)
    jax.block_until_ready((mu, scale))

    mu_ref, scale_ref = _reference(x, params)
    assert mu.shape == (batch, action_size)
    # bf16 MXU operands (f32 accumulation): ~1e-2 expected error.
    assert jnp.allclose(mu, mu_ref, atol=3e-2), "mu mismatch"
    assert jnp.allclose(scale, scale_ref, atol=1e-6), "scale mismatch"

    # Larger batch: exercises the multi-step "parallel" grid
    # (tb=256, grid=(2,)  ->  both TensorCores on v7x).
    batch2 = 512
    x2 = jax.random.normal(kx, (batch2, state_size), jnp.float32)
    mu2, _ = policy_forward(x2, params)
    jax.block_until_ready(mu2)
    mu2_ref, _ = _reference(x2, params)
    assert mu2.shape == (batch2, action_size)
    assert jnp.allclose(mu2, mu2_ref, atol=3e-2), "mu mismatch (batch=512)"

    # TODO(synk): sampling from Independent(Normal(mu, scale), 1) and the
    # optimizer-based update_* / get_action methods are host-side logic left
    # to the caller; the kernel produces the distribution parameters.
    print("KERNEL_OK")
</pallas_src>

<mosaic_0001>
module attributes {stable_mosaic.version = 11 : i64} {
  func.func @policy_fwd_kernel(%arg0: i32, %arg1: memref<8x16xf32, #tpu.memory_space<vmem>>, %arg2: memref<32x16xf32, #tpu.memory_space<vmem>>, %arg3: memref<32x1xf32, #tpu.memory_space<vmem>>, %arg4: memref<32x32xf32, #tpu.memory_space<vmem>>, %arg5: memref<32x1xf32, #tpu.memory_space<vmem>>, %arg6: memref<8x32xf32, #tpu.memory_space<vmem>>, %arg7: memref<8x1xf32, #tpu.memory_space<vmem>>, %arg8: memref<8x8xf32, #tpu.memory_space<vmem>>) attributes {dimension_semantics = [#tpu.dimension_semantics<parallel>], iteration_bounds = array<i64: 1>, scalar_prefetch = 0 : i64, scratch_operands = 0 : i64, tpu.core_type = #tpu.core_type<tc>, window_params = [{transform_indices = @transform_0, window_bounds = array<i64: 8, 16>}, {pipeline_mode = #tpu.pipeline_mode<synchronous>, transform_indices = @transform_1, window_bounds = array<i64: 32, 16>}, {pipeline_mode = #tpu.pipeline_mode<synchronous>, transform_indices = @transform_2, window_bounds = array<i64: 32, 1>}, {pipeline_mode = #tpu.pipeline_mode<synchronous>, transform_indices = @transform_3, window_bounds = array<i64: 32, 32>}, {pipeline_mode = #tpu.pipeline_mode<synchronous>, transform_indices = @transform_4, window_bounds = array<i64: 32, 1>}, {pipeline_mode = #tpu.pipeline_mode<synchronous>, transform_indices = @transform_5, window_bounds = array<i64: 8, 32>}, {pipeline_mode = #tpu.pipeline_mode<synchronous>, transform_indices = @transform_6, window_bounds = array<i64: 8, 1>}, {transform_indices = @transform_7, window_bounds = array<i64: 8, 8>}]} {
    %c0 = arith.constant 0 : index
    %c0_0 = arith.constant 0 : index
    %0 = vector.load %arg1[%c0, %c0_0] : memref<8x16xf32, #tpu.memory_space<vmem>>, vector<8x16xf32>
    %1 = tpu.transpose %0, [1, 0] : vector<8x16xf32> -> vector<16x8xf32>
    %2 = arith.truncf %1 : vector<16x8xf32> to vector<16x8xbf16>
    %c0_1 = arith.constant 0 : index
    %c0_2 = arith.constant 0 : index
    %3 = vector.load %arg2[%c0_1, %c0_2] : memref<32x16xf32, #tpu.memory_space<vmem>>, vector<32x16xf32>
    %4 = arith.truncf %3 : vector<32x16xf32> to vector<32x16xbf16>
    %cst = arith.constant dense<0.000000e+00> : vector<32x8xf32>
    %5 = tpu.matmul %4, %2, %cst {dimension_numbers = #tpu.dot_dimension_numbers<[1], [0], [0], [1], [0, 0, 1, 1], [], []>} : vector<32x16xbf16>, vector<16x8xbf16>, vector<32x8xf32> -> vector<32x8xf32>
    %c0_3 = arith.constant 0 : index
    %c0_4 = arith.constant 0 : index
    %6 = vector.load %arg3[%c0_3, %c0_4] : memref<32x1xf32, #tpu.memory_space<vmem>>, vector<32x1xf32>
    %7 = vector.broadcast %6 : vector<32x1xf32> to vector<32x8xf32>
    %8 = arith.addf %5, %7 : vector<32x8xf32>
    %cst_5 = arith.constant 0.000000e+00 : f32
    %9 = vector.broadcast %cst_5 : f32 to vector<32x8xf32>
    %10 = arith.maximumf %8, %9 : vector<32x8xf32>
    %c0_6 = arith.constant 0 : index
    %c0_7 = arith.constant 0 : index
    %11 = vector.load %arg4[%c0_6, %c0_7] : memref<32x32xf32, #tpu.memory_space<vmem>>, vector<32x32xf32>
    %12 = arith.truncf %11 : vector<32x32xf32> to vector<32x32xbf16>
    %13 = arith.truncf %10 : vector<32x8xf32> to vector<32x8xbf16>
    %cst_8 = arith.constant dense<0.000000e+00> : vector<32x8xf32>
    %14 = tpu.matmul %12, %13, %cst_8 {dimension_numbers = #tpu.dot_dimension_numbers<[1], [0], [0], [1], [0, 0, 1, 1], [], []>} : vector<32x32xbf16>, vector<32x8xbf16>, vector<32x8xf32> -> vector<32x8xf32>
    %c0_9 = arith.constant 0 : index
    %c0_10 = arith.constant 0 : index
    %15 = vector.load %arg5[%c0_9, %c0_10] : memref<32x1xf32, #tpu.memory_space<vmem>>, vector<32x1xf32>
    %16 = vector.broadcast %15 : vector<32x1xf32> to vector<32x8xf32>
    %17 = arith.addf %14, %16 : vector<32x8xf32>
    %cst_11 = arith.constant 0.000000e+00 : f32
    %18 = vector.broadcast %cst_11 : f32 to vector<32x8xf32>
    %19 = arith.maximumf %17, %18 : vector<32x8xf32>
    %c0_12 = arith.constant 0 : index
    %c0_13 = arith.constant 0 : index
    %20 = vector.load %arg6[%c0_12, %c0_13] : memref<8x32xf32, #tpu.memory_space<vmem>>, vector<8x32xf32>
    %21 = arith.truncf %20 : vector<8x32xf32> to vector<8x32xbf16>
    %22 = arith.truncf %19 : vector<32x8xf32> to vector<32x8xbf16>
    %cst_14 = arith.constant dense<0.000000e+00> : vector<8x8xf32>
    %23 = tpu.matmul %21, %22, %cst_14 {dimension_numbers = #tpu.dot_dimension_numbers<[1], [0], [0], [1], [0, 0, 1, 1], [], []>} : vector<8x32xbf16>, vector<32x8xbf16>, vector<8x8xf32> -> vector<8x8xf32>
    %c0_15 = arith.constant 0 : index
    %c0_16 = arith.constant 0 : index
    %24 = vector.load %arg7[%c0_15, %c0_16] : memref<8x1xf32, #tpu.memory_space<vmem>>, vector<8x1xf32>
    %25 = vector.broadcast %24 : vector<8x1xf32> to vector<8x8xf32>
    %26 = arith.addf %23, %25 : vector<8x8xf32>
    %27 = math.tanh %26 : vector<8x8xf32>
    %c0_17 = arith.constant 0 : index
    %c0_18 = arith.constant 0 : index
    %28 = vector.load %arg8[%c0_17, %c0_18] : memref<8x8xf32, #tpu.memory_space<vmem>>, vector<8x8xf32>
    tpu.vector_store %arg8[%c0_17, %c0_18], %27 {strides = array<i32>} : memref<8x8xf32, #tpu.memory_space<vmem>>, vector<8x8xf32>,
    return
  }
  func.func @transform_0(%arg0: i32) -> (i32, i32) {
    %c0_i32 = arith.constant 0 : i32
    %c0_i32_0 = arith.constant 0 : i32
    return %arg0, %c0_i32 : i32, i32
  }
  func.func @transform_1(%arg0: i32) -> (i32, i32) {
    %c0_i32 = arith.constant 0 : i32
    %c0_i32_0 = arith.constant 0 : i32
    %c0_i32_1 = arith.constant 0 : i32
    return %c0_i32, %c0_i32_0 : i32, i32
  }
  func.func @transform_2(%arg0: i32) -> (i32, i32) {
    %c0_i32 = arith.constant 0 : i32
    %c0_i32_0 = arith.constant 0 : i32
    %c0_i32_1 = arith.constant 0 : i32
    return %c0_i32, %c0_i32_0 : i32, i32
  }
  func.func @transform_3(%arg0: i32) -> (i32, i32) {
    %c0_i32 = arith.constant 0 : i32
    %c0_i32_0 = arith.constant 0 : i32
    %c0_i32_1 = arith.constant 0 : i32
    return %c0_i32, %c0_i32_0 : i32, i32
  }
  func.func @transform_4(%arg0: i32) -> (i32, i32) {
    %c0_i32 = arith.constant 0 : i32
    %c0_i32_0 = arith.constant 0 : i32
    %c0_i32_1 = arith.constant 0 : i32
    return %c0_i32, %c0_i32_0 : i32, i32
  }
  func.func @transform_5(%arg0: i32) -> (i32, i32) {
    %c0_i32 = arith.constant 0 : i32
    %c0_i32_0 = arith.constant 0 : i32
    %c0_i32_1 = arith.constant 0 : i32
    return %c0_i32, %c0_i32_0 : i32, i32
  }
  func.func @transform_6(%arg0: i32) -> (i32, i32) {
    %c0_i32 = arith.constant 0 : i32
    %c0_i32_0 = arith.constant 0 : i32
    %c0_i32_1 = arith.constant 0 : i32
    return %c0_i32, %c0_i32_0 : i32, i32
  }
  func.func @transform_7(%arg0: i32) -> (i32, i32) {
    %c0_i32 = arith.constant 0 : i32
    %c0_i32_0 = arith.constant 0 : i32
    return %c0_i32, %arg0 : i32, i32
  }
}

</mosaic_0001>

<bundles_post_ra>
// kernel: tpu_custom_call.1
= control target key start
LH: loop header
LB: loop body
LE: loop exit
PB: predicated region body
PF: predicated region fallthrough
CT: control target
= control target key end

     0   :  { %s375_s0 = inlined_call_operand.vmem [shape: f32[8,16], index: 0, kind: input, shape index: {}]   ;;  %s376_s1 = inlined_call_operand.vmem [shape: f32[32,16], index: 1, kind: input, shape index: {}]   ;;  %s377_s2 = inlined_call_operand.vmem [shape: f32[32,1], index: 2, kind: input, shape index: {}]   ;;  %s378_s3 = inlined_call_operand.vmem [shape: f32[32,32], index: 3, kind: input, shape index: {}]   ;;  %s379_s4 = inlined_call_operand.vmem [shape: f32[32,1], index: 4, kind: input, shape index: {}]   ;;  %s380_s5 = inlined_call_operand.vmem [shape: f32[8,32], index: 5, kind: input, shape index: {}]   ;;  %s381_s6 = inlined_call_operand.vmem [shape: f32[8,1], index: 6, kind: input, shape index: {}]   ;;  %s382_s7 = inlined_call_operand.hbm [shape: f32[8,8], index: 7, kind: output, shape index: {}]  }
   0x1   :  { %v28_v0 = vld [vmem:[%s375_s0] sm:$0xff] }
   0x2   :  { %12 = vsyncpa [#allocation3], 0  ;;  %29 = vxpose.xlu0.b32.start.end [1/1] (short) (narrow) %v28_v0, 16  ;;  %v71_v1 = vld [vmem:[%s377_s2 + $0x18] sm:$0xff]  ;;  %v270_v2 = vmov 0   ;;  %v68_v3 = vld [vmem:[%s377_s2] sm:$0xff] }
   0x3   :  { %240 = vset.pattern.permute.xlu1 %v270_v2  ;;  %241 = vset.pattern.permute.xlu2 %v270_v2  ;;  %v133_v4 = vld [vmem:[%s379_s4 + $0x18] sm:$0xff]  ;;  %v70_v5 = vld [vmem:[%s377_s2 + $0x10] sm:$0xff]  ;;  %v69_v6 = vld [vmem:[%s377_s2 + $0x8] sm:$0xff]  ;;  %vm92_vm0 = vcmask 130048   ;;  %vm154_vm1 = vcmask 261120   ;;  %s271_s9 = smov [#allocation2]  }
   0x4   :  { %89 = vperm.xlu1 %240, %v71_v1   ;;  %79 = vperm.xlu2 %241, %v69_v6   ;;  %v131_v8 = vld [vmem:[%s379_s4 + $0x8] sm:$0xff]  ;;  %v132_v9 = vld [vmem:[%s379_s4 + $0x10] sm:$0xff]  ;;  %v62_v10 = vld [vmem:[%s376_s1] sm:$0xff]  ;;  %s218_s10 = sshll.u32 %s271_s9, 4  ;;  %s220_s13 = sshll.u32 %s382_s7, 4  ;;  %vm211_vm2 = vcmask 64512   ;;  %s219_s10 = int_to_ptr.vmem [resolvable:$true] %s218_s10  ;;  %s221_s13 = int_to_ptr.hbm [resolvable:$true] %s220_s13 }
   0x5   :  { %v63_v11 = vld [vmem:[%s376_s1 + $0x8] sm:$0xff]  ;;  %v130_v15 = vld [vmem:[%s379_s4] sm:$0xff]  ;;  %v64_v17 = vld [vmem:[%s376_s1 + $0x10] sm:$0xff] }
   0x6   :  { %v66_v14 = vpack.c.bf16 %v63_v11, %v62_v10  ;;  %v188_v16 = vld [vmem:[%s381_s6] sm:$0xff]  ;;  %v65_v18 = vld [vmem:[%s376_s1 + $0x18] sm:$0xff]  ;;  %v123_v38 = vld [vmem:[%s378_s3 + $0x8] sm:$0xff] }
   0x7   :  { %v67_v19 = vpack.c.bf16 %v65_v18, %v64_v17  ;;  %v122_v36 = vld [vmem:[%s378_s3] sm:$0xff]  ;;  %v124_v39 = vld [vmem:[%s378_s3 + $0x10] sm:$0xff]  ;;  %v125_v40 = vld [vmem:[%s378_s3 + $0x18] sm:$0xff] }
   0x8   :  { %v126_v42 = vpack.c.bf16 %v123_v38, %v122_v36  ;;  %v127_v43 = vpack.c.bf16 %v125_v40, %v124_v39  ;;  %v184_v61 = vld [vmem:[%s380_s5] sm:$0xff] }
   0x9   :  { %v185_v63 = vpack.c.bf16 %v184_v61, %v184_v61 }
   0xc   :  { %74 = vperm.xlu1 %240, %v68_v3   ;;  %146 = vperm.xlu2 %241, %v132_v9  }
  0x14   :  { %151 = vperm.xlu1 %240, %v133_v4   ;;  %136 = vperm.xlu2 %241, %v130_v15  }
  0x1c   :  { %141 = vperm.xlu1 %240, %v131_v8   ;;  %191 = vperm.xlu2 %241, %v188_v16  }
  0x5e   :  { %v80_v27 = vpop.permute.xlu2 %79 }
  0x66   :  { %v147_v46 = vpop.permute.xlu2 %146 }
  0x69   :  { %239 = vset.pattern.permute.xlu0 %v270_v2 }
  0x6e   :  { %v137_v54 = vpop.permute.xlu2 %136 }
  0x76   :  { %v90_v22 = vpop.permute.xlu1 %89  ;;  %v192_v0 = vpop.permute.xlu2 %191 }
  0x78   :  { %84 = vperm.xlu0 %239, %v70_v5  }
  0x7e   :  { %v75_v25 = vpop.permute.xlu1 %74 }
  0x86   :  { %v152_v45 = vpop.permute.xlu1 %151 }
  0x8e   :  { %v142_v50 = vpop.permute.xlu1 %141 }
  0xa6   :  { %v45_v7 = vpop.trf.xlu0 }
  0xae   :  { %v46_v12 = vpop.trf.xlu0 }
  0xaf   :  { %v61_v13 = vpack.c.bf16 %v46_v12, %v45_v7 }
  0xb1   :  { %106 = vmatpush.bf16.msra.mxu0 %v61_v13 }
  0xb4   :  { %229 = vmatmul.msk.bf16.vlgmr.msra.gmra.mxu0 %vm92_vm0, %v66_v14 }
  0xc4   :  { %230 = vmatmul.msk.bf16.gmra.mxu0 %vm92_vm0, %v67_v19 }
  0xea   :  { %v85_v24 = vpop.permute.xlu0 %84 }
 0x131   :  { %v108_v20 = vpop.f32.mrf.mxu0 }
 0x132   :  { %v109_v31 = vadd.f32 %v108_v20, %v75_v25 }
 0x134   :  { %v118_v37 = vmax.f32 %v109_v31, 0.0 }
 0x139   :  { %v110_v21 = vpop.f32.mrf.mxu0 }
 0x13a   :  { %v111_v29 = vadd.f32 %v110_v21, %v80_v27 }
 0x13c   :  { %v119_v34 = vmax.f32 %v111_v29, 0.0 }
 0x13e   :  { %v128_v41 = vpack.c.bf16 %v119_v34, %v118_v37 }
 0x141   :  { %v113_v23 = vpop.f32.mrf.mxu0 }
 0x142   :  { %v114_v26 = vadd.f32 %v113_v23, %v85_v24 }
 0x144   :  { %v120_v32 = vmax.f32 %v114_v26, 0.0 }
 0x149   :  { %v115_v28 = vpop.f32.mrf.mxu0 }
 0x14a   :  { %v116_v30 = vadd.f32 %v115_v28, %v90_v22 }
 0x14c   :  { %v121_v33 = vmax.f32 %v116_v30, 0.0 }
 0x14e   :  { %v129_v35 = vpack.c.bf16 %v121_v33, %v120_v32 }
 0x150   :  { %167 = vmatpush.bf16.msra.mxu1 %v129_v35  ;;  %234 = vmatpush.bf16.msra.mxu3 %v129_v35 }
 0x154   :  { %168 = vmatpush.bf16.msra.mxu1 %v128_v41  ;;  %235 = vmatpush.bf16.msra.mxu3 %v128_v41 }
 0x157   :  { %231 = vmatmul.msk.bf16.vlgmr.msra.gmra.mxu1 %vm154_vm1, %v126_v42  ;;  %232 = vmatmul.msk.bf16.vlgmr.msra.gmra.mxu3 %vm154_vm1, %v127_v43 }
 0x1d4   :  { %v170_v44 = vpop.f32.mrf.mxu1 }
 0x1d5   :  { %v171_v55 = vadd.f32 %v170_v44, %v137_v54 }
 0x1d7   :  { %v180_v60 = vmax.f32 %v171_v55, 0.0 }
 0x1da   :  { %v175_v47 = vpop.f32.mrf.mxu3 }
 0x1db   :  { %v176_v49 = vadd.f32 %v175_v47, %v147_v46 }
 0x1dc   :  { %v172_v48 = vpop.f32.mrf.mxu1 }
 0x1dd   :  { %v173_v52 = vadd.f32 %v172_v48, %v142_v50  ;;  %v182_v56 = vmax.f32 %v176_v49, 0.0 }
 0x1df   :  { %v181_v58 = vmax.f32 %v173_v52, 0.0 }
 0x1e1   :  { %v186_v62 = vpack.c.bf16 %v181_v58, %v180_v60 }
 0x1e2   :  { %v177_v51 = vpop.f32.mrf.mxu3 }
 0x1e3   :  { %v178_v53 = vadd.f32 %v177_v51, %v152_v45 }
 0x1e5   :  { %v183_v57 = vmax.f32 %v178_v53, 0.0 }
 0x1e7   :  { %v187_v59 = vpack.c.bf16 %v183_v57, %v182_v56 }
 0x1e9   :  { %203 = vmatpush.bf16.msra.mxu2 %v187_v59 }
 0x1ed   :  { %204 = vmatpush.bf16.msra.mxu2 %v186_v62 }
 0x1f0   :  { %233 = vmatmul.msk.bf16.vlgmr.msra.gmra.mxu2 %vm154_vm1, %v185_v63 }
 0x273   :  { %v206_v1 = vpop.f32.mrf.mxu2 }
 0x274   :  { %v207_v2 = vadd.f32 %v206_v1, %v192_v0 }
 0x276   :  { %242 = vtanh.f32 %v207_v2 }
 0x27b   :  { %v208_v3 = vpop.f32.mrf.mxu2 }
 0x27c   :  { %v243_v4 = vpop.eup %242 }
 0x27d   :  { %212 = vst.msk [vmem:[#allocation2] sm:$0xff] %vm211_vm2, %v243_v4 }
 0x27e   :  { %223 = dma.vmem_to_hbm [thread:$0]  %s219_s10, 128, %s221_s13, [#allocation3]  }
 0x27f   :  { %268 = dma.done.wait [#allocation3], 128  }
 0x280   :  { %269 = vsyncadd [#allocation3], 4294967168 }
 0x281   :  { %228 = vsyncpa [#allocation3], 1 }

</bundles_post_ra>
